<compile_context>
chip_gen: v5e
topology: v5e:2x2
jax: 0.10.0
libtpu: 0.0.40
codegen_flags: <defaults>
</compile_context>

<pallas_src>
import functools
import math

import numpy as np
import jax
import jax.numpy as jnp
from jax.experimental import pallas as pl
from jax.experimental.pallas import tpu as pltpu


# ------------------------------- kernels ------------------------------------

def _input_layer_kernel(tm_ref, dp_ref, embed_ref, out_ref, *, D, H):
    """Full dep-graph variant: one (batch, sequence-tile) block per grid step.

    tm_ref:    (1, St, 2)   f32  [:, :, 0] = time-since-start, [:, :, 1] = mask (0/1)
    dp_ref:    (2, H)       f32  row 0 = interleaved sin/cos freqs, row 1 = phase (0 / pi/2)
    embed_ref: (1, St, D*H)      data embeddings, dep-graph levels flattened on lanes
    out_ref:   (1, St, D*H)
    """
    t = tm_ref[0, :, 0:1]          # (St, 1) sublane-oriented
    m = tm_ref[0, :, 1:2]          # (St, 1)
    St = t.shape[0]

    # Temporal position encoding; cos(x) == sin(x + pi/2) -> one EUP op per element.
    angle = t * dp_ref[0:1, :] + dp_ref[1:2, :]        # (St, H) outer-product broadcast
    acc = jnp.sin(angle)                               # f32 accumulator

    # Hoisted 0/1 mask broadcast in the OUTPUT dtype (exact for 0/1; bf16 VALU on v6e/v7x).
    m_b = jnp.broadcast_to(m.astype(out_ref.dtype), (St, H))

    # Dep-graph cumsum: level d output = time_embed + sum_{d' <= d} embed[d'].
    # H is a multiple of 128 (wrapper guarantees) -> aligned, unmasked lane slices.
    for d in range(D):
        lo = d * H
        acc = acc + embed_ref[0, :, lo:lo + H].astype(jnp.float32)
        out_ref[0, :, lo:lo + H] = acc.astype(out_ref.dtype) * m_b


def _input_layer_gen_kernel(tm_ref, dp_ref, embed_ref, out_ref, *, T, H):
    """Generation-target variant: accumulate the first T levels, emit only level T-1.

    embed_ref: (1, St, T*H)   (only the first T levels are DMA'd)
    out_ref:   (1, St, H)
    """
    t = tm_ref[0, :, 0:1]
    m = tm_ref[0, :, 1:2]
    St = t.shape[0]

    angle = t * dp_ref[0:1, :] + dp_ref[1:2, :]
    acc = jnp.sin(angle)
    for d in range(T):
        lo = d * H
        acc = acc + embed_ref[0, :, lo:lo + H].astype(jnp.float32)

    m_b = jnp.broadcast_to(m.astype(out_ref.dtype), (St, H))
    out_ref[0, :, :] = acc.astype(out_ref.dtype) * m_b


# ------------------------------- tiling -------------------------------------

def _vmem_budgets():
    """Generation-aware (block_budget, vmem_limit) derived from physical VMEM."""
    cap = 128 << 20
    try:
        info = pltpu.get_tpu_info()
        cap = int(getattr(info, "vmem_capacity_bytes", cap))
    except Exception:
        pass
    # ~3/8 of VMEM for pipelined blocks: 48 MiB on 128 MiB parts, 24 MiB on v7x (64 MiB).
    block_budget = min(max(cap * 3 // 8, 16 << 20), 64 << 20)
    vmem_limit = max(min(cap * 7 // 8, cap - (8 << 20)), block_budget + (8 << 20))
    return block_budget, int(vmem_limit)


def _choose_s_tile(S, B, in_row_bytes, out_row_bytes, temp_row_bytes, budget_bytes,
                   min_total_tiles=2):
    """Largest sublane-aligned divisor of S whose double-buffered in+out blocks plus
    in-kernel temporaries fit the budget; prefers >= min_total_tiles grid blocks so
    both v7x TensorCores get work (no-op on single-TC v5e/v6e)."""
    divisors = [t for t in range(S, 0, -1) if S % t == 0]
    aligned = [t for t in divisors if t % 8 == 0 or t == S]   # descending, non-empty (t==S)

    def fits(t):
        return 2 * t * (in_row_bytes + out_row_bytes) + t * temp_row_bytes <= budget_bytes

    for t in aligned:
        if fits(t) and B * (S // t) >= min_total_tiles:
            return t
    for t in aligned:
        if fits(t):
            return t
    return aligned[-1]


# ------------------------------- wrapper ------------------------------------

def nested_attention_input_layer(time_delta, event_mask, data_embed, div_full, even_mask,
                                 dep_graph_el_generation_target=None, *,
                                 s_tile=None, vmem_limit_bytes=None, donate_embed=False):
    """Wrapper: PyTorch-layout tensors in, PyTorch-layout tensor out.

    time_delta: (B, S) float32
    event_mask: (B, S) bool
    data_embed: (B, S, D, H)            (output of DataEmbeddingLayer)
    div_full:   (H,) float32            interleaved sin/cos div terms
    even_mask:  (H,) float32            1 at even (sin) hidden positions
    returns:    (B, S, D, H)            (or (B, S, 1, H) if a generation target is given)
    """
    B, S, D, H = data_embed.shape
    out_dtype = data_embed.dtype
    itemsize = jnp.dtype(out_dtype).itemsize

    # --- lane alignment: pad H up to a multiple of 128 (no-op at production shapes) ---
    Hp = 128 * pl.cdiv(H, 128)
    if Hp != H:
        data_embed_p = jnp.pad(data_embed, ((0, 0), (0, 0), (0, 0), (0, Hp - H)))
        div_p = jnp.pad(div_full.astype(jnp.float32), (0, Hp - H))
        even_p = jnp.pad(even_mask.astype(jnp.float32), (0, Hp - H), constant_values=1.0)
    else:
        data_embed_p = data_embed
        div_p = div_full.astype(jnp.float32)
        even_p = even_mask.astype(jnp.float32)
    phase_p = (1.0 - even_p) * (math.pi / 2.0)
    dp = jnp.stack([div_p, phase_p], axis=0)                    # (2, Hp)

    # --- time_from_deltas, hoisted out of the kernel (only B*S floats of traffic) ---
    td = jnp.where(event_mask, time_delta.astype(jnp.float32), 0.0)
    csum = jnp.cumsum(td, axis=-1)
    t = jnp.concatenate([jnp.zeros_like(td[:, :1]), csum[:, :-1]], axis=-1)      # (B, S)
    tm = jnp.stack([t, event_mask.astype(jnp.float32)], axis=-1)                 # (B, S, 2)

    # Free (contiguous) reshape: flatten (D, Hp) onto the lane axis; no transposes.
    embed_flat = data_embed_p.reshape(B, S, D * Hp)

    block_budget, auto_limit = _vmem_budgets()
    if vmem_limit_bytes is None:
        vmem_limit_bytes = auto_limit

    target = dep_graph_el_generation_target
    if target is not None:
        assert 1 <= target <= D, (target, D)
        in_row_bytes, out_row_bytes = target * Hp * itemsize, Hp * itemsize
    else:
        in_row_bytes = out_row_bytes = D * Hp * itemsize
    temp_row_bytes = 4 * Hp * 4 + 1024      # angle + acc + mask broadcast + level slice

    if s_tile is None:
        s_tile = _choose_s_tile(S, B, in_row_bytes, out_row_bytes, temp_row_bytes,
                                block_budget)
    assert S % s_tile == 0, (S, s_tile)

    grid = (B, S // s_tile)
    tm_spec = pl.BlockSpec((1, s_tile, 2), lambda b, s: (b, s, 0))
    dp_spec = pl.BlockSpec((2, Hp), lambda b, s: (0, 0))

    if target is None:
        kernel = functools.partial(_input_layer_kernel, D=D, H=Hp)
        embed_spec = pl.BlockSpec((1, s_tile, D * Hp), lambda b, s: (b, s, 0))
        out_spec = pl.BlockSpec((1, s_tile, D * Hp), lambda b, s: (b, s, 0))
        out_shape = jax.ShapeDtypeStruct((B, S, D * Hp), out_dtype)
        flops = 2 * B * S * Hp * (D + 1)
        bytes_accessed = 2 * B * S * D * Hp * itemsize + B * S * 8 + 8 * Hp
    else:
        kernel = functools.partial(_input_layer_gen_kernel, T=target, H=Hp)
        embed_spec = pl.BlockSpec((1, s_tile, target * Hp), lambda b, s: (b, s, 0))
        out_spec = pl.BlockSpec((1, s_tile, Hp), lambda b, s: (b, s, 0))
        out_shape = jax.ShapeDtypeStruct((B, S, Hp), out_dtype)
        flops = B * S * Hp * (target + 3)
        bytes_accessed = B * S * (target + 1) * Hp * itemsize + B * S * 8 + 8 * Hp

    io_aliases = {}
    if donate_embed and target is None and Hp == H:
        io_aliases = {2: 0}     # embed_flat is fully read before each block's writeback

    out = pl.pallas_call(
        kernel,
        out_shape=out_shape,
        grid_spec=pltpu.PrefetchScalarGridSpec(
            num_scalar_prefetch=0,
            grid=grid,
            in_specs=[tm_spec, dp_spec, embed_spec],
            out_specs=out_spec,
        ),
        compiler_params=pltpu.CompilerParams(
            dimension_semantics=("parallel", "parallel"),
            vmem_limit_bytes=int(vmem_limit_bytes),
        ),
        cost_estimate=pl.CostEstimate(
            flops=flops, transcendentals=B * S * Hp, bytes_accessed=bytes_accessed),
        input_output_aliases=io_aliases,
    )(tm, dp, embed_flat)

    if target is None:
        embed = out.reshape(B, S, D, Hp)[..., :H]
    else:
        embed = out[..., :H].reshape(B, S, 1, H)
    return embed


# ------------------------------ reference -----------------------------------

def make_temporal_params(hidden_size, max_timepoint=10000.0):
    """Deterministic init matching TemporalPositionEncoding (do_use_sinusoidal=False)."""
    div_term = np.exp(np.arange(0, hidden_size, 2, dtype=np.float64)
                      * (-math.log(max_timepoint) / hidden_size)).astype(np.float32)
    sin_div = div_term
    cos_div = div_term if hidden_size % 2 == 0 else div_term[:-1]
    div_full = np.zeros((hidden_size,), np.float32)
    div_full[0::2] = sin_div
    div_full[1::2] = cos_div
    even_mask = np.zeros((hidden_size,), np.float32)
    even_mask[0::2] = 1.0
    return jnp.asarray(div_full), jnp.asarray(even_mask)


def reference_forward(time_delta, event_mask, data_embed, div_full, even_mask,
                      dep_graph_el_generation_target=None):
    """Pure-JAX reference matching the PyTorch forward semantics."""
    t_deltas = jnp.where(event_mask, time_delta, 0.0)
    csum = jnp.cumsum(t_deltas, axis=-1)
    t = jnp.concatenate([jnp.zeros_like(t_deltas[:, :1]), csum[:, :-1]], axis=-1)
    angle = t[..., None] * div_full[None, None, :]
    time_embed = jnp.where(even_mask[None, None, :] > 0.5, jnp.sin(angle), jnp.cos(angle))
    embed = data_embed.at[:, :, 0, :].add(time_embed)
    embed = jnp.cumsum(embed, axis=2)
    if dep_graph_el_generation_target is not None:
        embed = embed[:, :, dep_graph_el_generation_target - 1][:, :, None, :]
    embed = jnp.where(event_mask[:, :, None, None], embed, 0.0)
    return embed


if __name__ == "__main__":
    B, S, D, H = 2, 8, 3, 32     # batch, seq, dep-graph levels, hidden

    key = jax.random.PRNGKey(0)
    k1, k2, k3 = jax.random.split(key, 3)
    time_delta = jax.random.uniform(k1, (B, S), jnp.float32, 0.1, 2.0)
    event_mask = jax.random.uniform(k2, (B, S)) > 0.2
    data_embed = jax.random.normal(k3, (B, S, D, H), jnp.float32)

    div_full, even_mask = make_temporal_params(H)

    # Full dep-graph path.
    out = nested_attention_input_layer(time_delta, event_mask, data_embed,
                                       div_full, even_mask)
    out = jax.block_until_ready(out)
    ref = reference_forward(time_delta, event_mask, data_embed, div_full, even_mask)
    np.testing.assert_allclose(np.asarray(out), np.asarray(ref), rtol=1e-5, atol=1e-5)

    # Generation-target path (reads only the first `target` levels, writes one).
    target = 2
    out_g = nested_attention_input_layer(time_delta, event_mask, data_embed,
                                         div_full, even_mask,
                                         dep_graph_el_generation_target=target)
    out_g = jax.block_until_ready(out_g)
    ref_g = reference_forward(time_delta, event_mask, data_embed, div_full, even_mask,
                              dep_graph_el_generation_target=target)
    np.testing.assert_allclose(np.asarray(out_g), np.asarray(ref_g), rtol=1e-5, atol=1e-5)

    print("KERNEL_OK")
</pallas_src>

<mosaic_0001>
module attributes {stable_mosaic.version = 11 : i64} {
  func.func @_input_layer_kernel(%arg0: i32, %arg1: i32, %arg2: memref<1x8x2xf32, #tpu.memory_space<vmem>>, %arg3: memref<2x128xf32, #tpu.memory_space<vmem>>, %arg4: memref<1x8x384xf32, #tpu.memory_space<vmem>>, %arg5: memref<1x8x384xf32, #tpu.memory_space<vmem>>) attributes {dimension_semantics = [#tpu.dimension_semantics<parallel>, #tpu.dimension_semantics<parallel>], iteration_bounds = array<i64: 2, 1>, scalar_prefetch = 0 : i64, scratch_operands = 0 : i64, tpu.core_type = #tpu.core_type<tc>, window_params = [{transform_indices = @transform_0, window_bounds = array<i64: 1, 8, 2>}, {pipeline_mode = #tpu.pipeline_mode<synchronous>, transform_indices = @transform_1, window_bounds = array<i64: 2, 128>}, {transform_indices = @transform_2, window_bounds = array<i64: 1, 8, 384>}, {transform_indices = @transform_3, window_bounds = array<i64: 1, 8, 384>}]} {
    %c0 = arith.constant 0 : index
    %c0_0 = arith.constant 0 : index
    %c0_1 = arith.constant 0 : index
    %0 = vector.load %arg2[%c0, %c0_0, %c0_1] : memref<1x8x2xf32, #tpu.memory_space<vmem>>, vector<1x8x1xf32>
    %1 = vector.shape_cast %0 : vector<1x8x1xf32> to vector<8x1xf32>
    %c0_2 = arith.constant 0 : index
    %c0_3 = arith.constant 0 : index
    %c1 = arith.constant 1 : index
    %2 = vector.load %arg2[%c0_2, %c0_3, %c1] : memref<1x8x2xf32, #tpu.memory_space<vmem>>, vector<1x8x1xf32>
    %3 = vector.shape_cast %2 : vector<1x8x1xf32> to vector<8x1xf32>
    %c0_4 = arith.constant 0 : index
    %c0_5 = arith.constant 0 : index
    %4 = vector.load %arg3[%c0_4, %c0_5] : memref<2x128xf32, #tpu.memory_space<vmem>>, vector<1x128xf32>
    %5 = vector.broadcast %1 : vector<8x1xf32> to vector<8x128xf32>
    %6 = vector.broadcast %4 : vector<1x128xf32> to vector<8x128xf32>
    %7 = arith.mulf %5, %6 : vector<8x128xf32>
    %c1_6 = arith.constant 1 : index
    %c0_7 = arith.constant 0 : index
    %8 = vector.load %arg3[%c1_6, %c0_7] : memref<2x128xf32, #tpu.memory_space<vmem>>, vector<1x128xf32>
    %9 = vector.broadcast %8 : vector<1x128xf32> to vector<8x128xf32>
    %10 = arith.addf %7, %9 : vector<8x128xf32>
    %11 = math.sin %10 : vector<8x128xf32>
    %12 = vector.shape_cast %3 : vector<8x1xf32> to vector<8x1xf32>
    %13 = vector.broadcast %12 : vector<8x1xf32> to vector<8x128xf32>
    %c0_8 = arith.constant 0 : index
    %c0_9 = arith.constant 0 : index
    %c0_10 = arith.constant 0 : index
    %14 = vector.load %arg4[%c0_8, %c0_9, %c0_10] : memref<1x8x384xf32, #tpu.memory_space<vmem>>, vector<1x8x128xf32>
    %15 = vector.shape_cast %14 : vector<1x8x128xf32> to vector<8x128xf32>
    %16 = arith.addf %11, %15 : vector<8x128xf32>
    %17 = arith.mulf %16, %13 : vector<8x128xf32>
    %c0_11 = arith.constant 0 : index
    %c0_12 = arith.constant 0 : index
    %c0_13 = arith.constant 0 : index
    %18 = vector.load %arg5[%c0_11, %c0_12, %c0_13] : memref<1x8x384xf32, #tpu.memory_space<vmem>>, vector<1x8x128xf32>
    %19 = vector.shape_cast %18 : vector<1x8x128xf32> to vector<8x128xf32>
    %20 = vector.shape_cast %17 : vector<8x128xf32> to vector<1x8x128xf32>
    tpu.vector_store %arg5[%c0_11, %c0_12, %c0_13], %20 {strides = array<i32>} : memref<1x8x384xf32, #tpu.memory_space<vmem>>, vector<1x8x128xf32>,
    %c0_14 = arith.constant 0 : index
    %c0_15 = arith.constant 0 : index
    %c128 = arith.constant 128 : index
    %21 = vector.load %arg4[%c0_14, %c0_15, %c128] : memref<1x8x384xf32, #tpu.memory_space<vmem>>, vector<1x8x128xf32>
    %22 = vector.shape_cast %21 : vector<1x8x128xf32> to vector<8x128xf32>
    %23 = arith.addf %16, %22 : vector<8x128xf32>
    %24 = arith.mulf %23, %13 : vector<8x128xf32>
    %c0_16 = arith.constant 0 : index
    %c0_17 = arith.constant 0 : index
    %c128_18 = arith.constant 128 : index
    %25 = vector.load %arg5[%c0_16, %c0_17, %c128_18] : memref<1x8x384xf32, #tpu.memory_space<vmem>>, vector<1x8x128xf32>
    %26 = vector.shape_cast %25 : vector<1x8x128xf32> to vector<8x128xf32>
    %27 = vector.shape_cast %24 : vector<8x128xf32> to vector<1x8x128xf32>
    tpu.vector_store %arg5[%c0_16, %c0_17, %c128_18], %27 {strides = array<i32>} : memref<1x8x384xf32, #tpu.memory_space<vmem>>, vector<1x8x128xf32>,
    %c0_19 = arith.constant 0 : index
    %c0_20 = arith.constant 0 : index
    %c256 = arith.constant 256 : index
    %28 = vector.load %arg4[%c0_19, %c0_20, %c256] : memref<1x8x384xf32, #tpu.memory_space<vmem>>, vector<1x8x128xf32>
    %29 = vector.shape_cast %28 : vector<1x8x128xf32> to vector<8x128xf32>
    %30 = arith.addf %23, %29 : vector<8x128xf32>
    %31 = arith.mulf %30, %13 : vector<8x128xf32>
    %c0_21 = arith.constant 0 : index
    %c0_22 = arith.constant 0 : index
    %c256_23 = arith.constant 256 : index
    %32 = vector.load %arg5[%c0_21, %c0_22, %c256_23] : memref<1x8x384xf32, #tpu.memory_space<vmem>>, vector<1x8x128xf32>
    %33 = vector.shape_cast %32 : vector<1x8x128xf32> to vector<8x128xf32>
    %34 = vector.shape_cast %31 : vector<8x128xf32> to vector<1x8x128xf32>
    tpu.vector_store %arg5[%c0_21, %c0_22, %c256_23], %34 {strides = array<i32>} : memref<1x8x384xf32, #tpu.memory_space<vmem>>, vector<1x8x128xf32>,
    return
  }
  func.func @transform_0(%arg0: i32, %arg1: i32) -> (i32, i32, i32) {
    %c0_i32 = arith.constant 0 : i32
    %c0_i32_0 = arith.constant 0 : i32
    return %arg0, %arg1, %c0_i32 : i32, i32, i32
  }
  func.func @transform_1(%arg0: i32, %arg1: i32) -> (i32, i32) {
    %c0_i32 = arith.constant 0 : i32
    %c0_i32_0 = arith.constant 0 : i32
    %c0_i32_1 = arith.constant 0 : i32
    return %c0_i32, %c0_i32_0 : i32, i32
  }
  func.func @transform_2(%arg0: i32, %arg1: i32) -> (i32, i32, i32) {
    %c0_i32 = arith.constant 0 : i32
    %c0_i32_0 = arith.constant 0 : i32
    return %arg0, %arg1, %c0_i32 : i32, i32, i32
  }
  func.func @transform_3(%arg0: i32, %arg1: i32) -> (i32, i32, i32) {
    %c0_i32 = arith.constant 0 : i32
    %c0_i32_0 = arith.constant 0 : i32
    return %arg0, %arg1, %c0_i32 : i32, i32, i32
  }
}

</mosaic_0001>

<bundles_post_ra>
// kernel: tpu_custom_call.1
= control target key start
LH: loop header
LB: loop body
LE: loop exit
PB: predicated region body
PF: predicated region fallthrough
CT: control target
= control target key end

     0   :  { %8 = vsyncpa [#allocation3], 0  ;;  %s970_s0 = inlined_call_operand.vmem [shape: f32[2,8,2], index: 0, kind: input, shape index: {}]   ;;  %s971_s1 = inlined_call_operand.vmem [shape: f32[2,128], index: 1, kind: input, shape index: {}]   ;;  %s972_s2 = inlined_call_operand.hbm [shape: f32[2,8,384], index: 2, kind: input, shape index: {}]   ;;  %s973_s3 = inlined_call_operand.hbm [shape: f32[2,8,384], index: 3, kind: output, shape index: {}]  }
   0x1   :  { %10 = vsyncpa [#allocation3 + $0x1], 0 }
   0x2   :  { %11 = vsyncpa [#allocation4], 0 }
   0x3   :  { %13 = vsyncpa [#allocation4 + $0x1], 0  ;;  %s769_s12 = smov 0   ;;  %s771_s13 = smov 0  }
   0x4   :  { %s773_s14 = smov 0   ;;  %s775_s15 = smov 0  }
   0x5   :  { %s777_s16 = smov 0   ;;  %s779_s17 = smov 0  }
   0x6 LB: > { %s536_s18 = sadd.s32 4294967295, %s739_s17   ;;  %s537_s19 = sadd.s32 4294967294, %s739_s17   ;;  %s739_s17 = sphi %s779_s17, %s19_s17   ;;  %s735_s16 = sphi %s777_s16, %s982_s16   ;;  %s731_s15 = sphi %s775_s15, %s981_s15   ;;  %s727_s14 = sphi %s773_s14, %s980_s14   ;;  %s723_s13 = sphi %s771_s13, %s979_s13   ;;  %s719_s12 = sphi %s769_s12, %s978_s12  }
   0x7   : > { %s31_s20 = sadd.s32 1, %s735_s16  ;;  %s89_s21 = sadd.s32 1, %s727_s14 }
   0x8   : > { %p33_p0 = scmp.ge.s32.totalorder %s31_s20, 2  ;;  %p96_p1 = scmp.ne.s32.totalorder %s727_s14, %s723_s13 }
   0x9   : > { %p97_p2 = scmp.eq.s32.totalorder %s739_s17, 0  ;;  %p102_p3 = scmp.ne.s32.totalorder %s723_s13, %s719_s12 }
   0xa   : > { %s984_s20 = smov (%p33_p0, %s31_s20), 0  ;;  %p103_p5 = scmp.eq.s32.totalorder %s536_s18, 0 }
   0xb   : > { %p810_p4 = por %p97_p2, %p96_p1  ;;  %s84_s23 = ssub.s32 %s735_s16, %s984_s20 }
   0xc   : > { %p128_p6 = scmp.eq.s32.totalorder %s536_s18, 1  ;;  %p87_p7 = scmp.eq.s32.totalorder %s84_s23, 0 }
   0xd   : > { %p816_p8 = por %p103_p5, %p102_p3  ;;  %p134_p10 = scmp.eq.s32.totalorder %s537_s19, 1 }
   0xe   : > { %p820_p9 = por %p128_p6, %p96_p1  ;;  %p539_p12 = scmp.ge.s32.totalorder %s739_s17, 2 }
   0xf   : > { %s825_s26 = scalar_select %p87_p7, %s727_s14, %s89_s21  }
  0x10   : > { %p827_p11 = por %p134_p10, %p102_p3  ;;  %p565_p13 = scmp.lt.s32.totalorder %s739_s17, 2 }
  0x11   : > { %s167_s28 = sand.u32 1, %s727_s14   ;;  %s550_s30 = smul.u32 24, %s735_s16 }
  0x12   : > { %s549_s29 = smul.u32 24, %s167_s28  ;;  %p558_p0 = pnand %p565_p13, %p810_p4 }
  0x13   : > { %p541_p2 = scmp.ge.s32.totalorder %s739_s17, 1  ;;  %s178_s6 = scalar_lea.hbm %s972_s2, %s550_s30 }
  0x14   : > { %s171_s7 = scalar_lea.vmem [#allocation2], %s549_s29  ;;  %s180_s9 = sshll.u32 %s178_s6, 4  ;;  %s181_s9 = int_to_ptr.hbm [resolvable:$true] %s180_s9 }
  0x15   : > { %s182_s8 = sshll.u32 %s171_s7, 4  ;;  %s168_s10 = scalar_lea.sflag [#allocation3], %s167_s28  ;;  %s183_s8 = int_to_ptr.vmem [resolvable:$true] %s182_s8 }
  0x16   : > { %560 = dma.hbm_to_vmem [thread:$0]  (!%p558_p0), %s181_s9, 384, %s183_s8, %s168_s10  }
  0x17   : > { %p187_p1 = scmp.lt.s32.totalorder %s739_s17, 3 }
  0x19   : > { %p188_p3 = pnand %p541_p2, %p187_p1 }
  0x1a   : > { %s843_s11 = sand.u32 (!%p188_p3), 1, %s723_s13  }
  0x1b   : > { %191 = sbr.rel (%p188_p3) target bundleno = 266 (0x10a), region = 32  ;;  %s194_s19 = scalar_lea.sflag (!%p188_p3), [#allocation3], %s843_s11 }
  0x1c   : > { %s551_s18 = smul.u32 (!%p188_p3), 24, %s843_s11 }
  0x1e   : > { %s849_s21 = scalar_lea.vmem (!%p188_p3), [#allocation2], %s551_s18 }
  0x20   : > { %710 = dma.done.wait (%p816_p8), %s194_s19, 384  }
  0x21   : > { %712 = vsyncadd (%p816_p8), %s194_s19, 4294966912  ;;  %p228_p4 = scmp.lt.s32.totalorder %s731_s15, 1  ;;  %v741_v0 = vmov 0   ;;  %v742_v2 = vmov 1   ;;  %v625_v3 = vld [vmem:[%s971_s1] ss:$0 sm:$0xff] }
  0x22   : > { %623 = vset.pattern.permute.xlu0 %v741_v0  ;;  %v626_v4 = vld [vmem:[%s971_s1 + $0x1] ss:$0 sm:$0xff]  ;;  %v743_v19 = vmov 683565275   ;;  %v744_v21 = vmov 2475754826  }
  0x23   : > { %s229_s22 = scalar_select %p228_p4, %s731_s15, 1  ;;  %v745_v24 = vmov 2131351028   ;;  %v746_v27 = vmov 2102212464  }
  0x24   : > { %v747_v30 = vmov 920167782   ;;  %v748_v33 = vmov 1326507024   ;;  %s552_s7 = smul.u32 24, %s731_s15  ;;  %s227_s15 = scalar_lea.vmem [#allocation5], %s551_s18 }
  0x25   : > { %s542_s23 = sshll.u32 %s229_s22, 3  ;;  %s434_s19 = sshll.u32 %s227_s15, 4  ;;  %s435_s19 = int_to_ptr.vmem [resolvable:$true] %s434_s19 }
  0x26   : > { %s234_s30 = scalar_lea.vmem %s970_s0, %s542_s23  ;;  %s432_s10 = scalar_lea.hbm %s973_s3, %s552_s7 }
  0x27   : > { %v235_v1 = vld [vmem:[%s234_s30] sm:$0xff]  ;;  %s436_s22 = sshll.u32 %s432_s10, 4  ;;  %s419_s23 = scalar_lea.sflag [#allocation4], %s843_s11  ;;  %s437_s22 = int_to_ptr.hbm [resolvable:$true] %s436_s22 }
  0x28   : > { %239 = vperm.xlu0 %623, %v235_v1   ;;  %s671_s28 = sshra.s32 %s437_s22, 4  ;;  %s677_s30 = scalar_lea.hbm %s973_s3, 48  ;;  %s672_s28 = int_to_ptr.hbm [resolvable:$true] %s671_s28 }
  0x29   : > { %s673_s29 = scalar_lea.hbm %s672_s28, 24  ;;  %p678_p8 = scmp.lt.s32.totalorder %s672_s28, %s973_s3 }
  0x2a   : > { %p674_p5 = scmp.ne.s32.totalorder %s672_s28, %s673_s29  ;;  %p679_p10 = scmp.lt.s32.totalorder %s677_s30, %s673_s29 }
  0x2c   : > { %p675_p6 = pnand %p674_p5, %p820_p9  ;;  %p680_p13 = por %p679_p10, %p678_p8 }
  0x2e   : > { %p676_p7 = pneg %p675_p6 }
  0x30   : > { %624 = vset.pattern.permute.xlu0 %v742_v2  ;;  %p681_p0 = pnand %p680_p13, %p676_p7 }
  0x31   : > { %403 = vperm.xlu0 %624, %v235_v1  }
  0x9a   : > { %v240_v5 = vpop.permute.xlu0 %239 }
  0x9b   : > { %v243_v6 = vmul.f32 %v625_v3, %v240_v5 }
  0x9d   : > { %v867_v7 = vadd.f32 %v626_v4, %v243_v6 }
  0x9f   : > { %v250_v8 = vand.u32 2139095040, %v867_v7  ;;  %v247_v11 = vand.u32 2147483647, %v867_v7  ;;  %vm249_vm12 = vcmp.lt.s32.totalorder %v867_v7, 0 }
  0xa1   : > { %v251_v9 = vshrl.u32 %v250_v8, 23  ;;  %v254_v13 = vand.u32 8388607, %v247_v11  ;;  %vm248_vm13 = vcmp.le.f32.partialorder %v247_v11, 0.7853982 }
  0xa3   : > { %v543_v10 = vadd.s32 4294967169, %v251_v9  ;;  %v255_v17 = vor.u32 8388608, %v254_v13 }
  0xa5   : > { %v257_v12 = vadd.s32 1, %v543_v10  ;;  %v884_v40 = vshll.u32 %v255_v17, 8 }
  0xa7   : > { %vm258_vm0 = vcmp.gt.s32.totalorder %v257_v12, 0  ;;  %v296_v49 = vand.u32 65535, %v884_v40  ;;  %v297_v54 = vshrl.u32 %v884_v40, 16 }
  0xa8   : > { %v259_v14 = vsel %vm258_vm0, %v257_v12, 0 }
  0xa9   : > { %v261_v15 = vand.u32 31, %v259_v14  ;;  %v875_v18 = vshrl.u32 %v259_v14, 5 }
  0xab   : > { %v873_v16 = vsub.s32 32, %v261_v15  ;;  %v264_v20 = vshll.u32 %v743_v19, %v261_v15  ;;  %v267_v22 = vshll.u32 %v744_v21, %v261_v15  ;;  %v270_v26 = vshll.u32 %v745_v24, %v261_v15 }
  0xac   : > { %v273_v29 = vshll.u32 %v746_v27, %v261_v15  ;;  %v276_v32 = vshll.u32 %v747_v30, %v261_v15  ;;  %vm279_vm1 = vcmp.lt.s32.totalorder %v875_v18, 1  ;;  %vm282_vm2 = vcmp.lt.s32.totalorder %v875_v18, 4 }
  0xad   : > { %v265_v23 = vshrl.u32 %v744_v21, %v873_v16  ;;  %v268_v25 = vshrl.u32 %v745_v24, %v873_v16  ;;  %v271_v28 = vshrl.u32 %v746_v27, %v873_v16  ;;  %v274_v31 = vshrl.u32 %v747_v30, %v873_v16 }
  0xae   : > { %v277_v34 = vshrl.u32 %v748_v33, %v873_v16  ;;  %vm281_vm3 = vcmp.lt.s32.totalorder %v875_v18, 3  ;;  %vm280_vm4 = vcmp.lt.s32.totalorder %v875_v18, 2  ;;  %v263_v13 = vshrl.u32 %v743_v19, %v873_v16 }
  0xaf   : > { %v266_v35 = vor.u32 %v265_v23, %v264_v20  ;;  %v269_v36 = vor.u32 %v268_v25, %v267_v22  ;;  %v272_v37 = vor.u32 %v271_v28, %v270_v26  ;;  %v275_v38 = vor.u32 %v274_v31, %v273_v29 }
  0xb0   : > { %v278_v39 = vor.u32 %v277_v34, %v276_v32 }
  0xb1   : > { %v287_v41 = vsel %vm279_vm1, %v266_v35, %v269_v36  ;;  %v291_v42 = vsel %vm279_vm1, %v269_v36, %v272_v37  ;;  %v288_v43 = vsel %vm282_vm2, %v275_v38, 920167782  ;;  %v284_v6 = vsel %vm282_vm2, %v272_v37, 2102212464 }
  0xb2   : > { %v292_v44 = vsel %vm282_vm2, %v278_v39, 1326507024  ;;  %v289_v45 = vsel %vm281_vm3, %v272_v37, %v288_v43  ;;  %v283_v23 = vsel %vm279_vm1, %v263_v13, %v266_v35  ;;  %v285_v24 = vsel %vm281_vm3, %v269_v36, %v284_v6 }
  0xb3   : > { %v293_v46 = vsel %vm281_vm3, %v275_v38, %v292_v44  ;;  %v290_v47 = vsel %vm280_vm4, %v287_v41, %v289_v45  ;;  %v286_v16 = vsel %vm280_vm4, %v283_v23, %v285_v24  ;;  %vm390_vm1 = vweird.f32 %v867_v7  ;;  %v410_v24 = vld [vmem:[%s849_s21 + $0x8] sm:$0xff] }
  0xb4   : > { %v294_v48 = vsel %vm280_vm4, %v291_v42, %v293_v46  ;;  %v320_v52 = vand.u32 65535, %v290_v47  ;;  %v321_v53 = vshrl.u32 %v290_v47, 16  ;;  %v340_v31 = vmul.u32 %v884_v40, %v286_v16 }
  0xb5   : > { %v298_v50 = vand.u32 65535, %v294_v48  ;;  %v299_v51 = vshrl.u32 %v294_v48, 16 }
  0xb6   : > { %v323_v56 = vmul.u32 %v321_v53, %v296_v49  ;;  %v324_v58 = vmul.u32 %v320_v52, %v297_v54  ;;  %v322_v61 = vmul.u32 %v320_v52, %v296_v49  ;;  %v325_v1 = vmul.u32 %v321_v53, %v297_v54 }
  0xb7   : > { %v301_v55 = vmul.u32 %v299_v51, %v296_v49  ;;  %v302_v57 = vmul.u32 %v298_v50, %v297_v54  ;;  %v300_v59 = vmul.u32 %v298_v50, %v296_v49  ;;  %v303_v63 = vmul.u32 %v299_v51, %v297_v54 }
  0xb8   : > { %v326_v62 = vshll.u32 %v323_v56, 16  ;;  %v328_v3 = vshll.u32 %v324_v58, 16  ;;  %v327_v21 = vshrl.u32 %v323_v56, 16  ;;  %v329_v27 = vshrl.u32 %v324_v58, 16 }
  0xb9   : > { %v304_v60 = vshll.u32 %v301_v55, 16  ;;  %v306_v2 = vshll.u32 %v302_v57, 16  ;;  %v305_v17 = vshrl.u32 %v301_v55, 16  ;;  %v307_v25 = vshrl.u32 %v302_v57, 16 }
  0xba   : > { %vm330_vm6 = vc.u32 %v322_v61, %v326_v62  ;;  %v332_v5 = vadd.s32 %v326_v62, %v322_v61 }
  0xbb   : > { %vm308_vm5 = vc.u32 %v300_v59, %v304_v60  ;;  %v310_v4 = vadd.s32 %v304_v60, %v300_v59  ;;  %v331_v9 = vsel %vm330_vm6, 1, %v741_v0 }
  0xbc   : > { %v309_v8 = vsel %vm308_vm5, 1, %v741_v0  ;;  %v333_v12 = vadd.s32 %v331_v9, %v325_v1  ;;  %vm334_vm8 = vc.u32 %v332_v5, %v328_v3  ;;  %v336_v29 = vadd.s32 %v332_v5, %v328_v3 }
  0xbd   : > { %v311_v10 = vadd.s32 %v309_v8, %v303_v63  ;;  %vm312_vm7 = vc.u32 %v310_v4, %v306_v2  ;;  %v335_v15 = vsel %vm334_vm8, 1, %v741_v0 }
  0xbe   : > { %v313_v14 = vsel %vm312_vm7, 1, %v741_v0  ;;  %v337_v22 = vadd.s32 %v335_v15, %v333_v12 }
  0xbf   : > { %v315_v20 = vadd.s32 %v313_v14, %v311_v10 }
  0xc0   : > { %v338_v28 = vadd.s32 %v337_v22, %v327_v21  ;;  %v406_v21 = vld [vmem:[%s849_s21] sm:$0xff] }
  0xc1   : > { %v316_v26 = vadd.s32 %v315_v20, %v305_v17 }
  0xc2   : > { %v339_v0 = vadd.s32 %v338_v28, %v329_v27  ;;  %v414_v27 = vld [vmem:[%s849_s21 + $0x10] sm:$0xff] }
  0xc3   : > { %v317_v19 = vadd.s32 %v316_v26, %v307_v25  ;;  %v404_v25 = vpop.permute.xlu0 %403 }
  0xc4   : > { %v343_v30 = vadd.s32 1, %v339_v0 }
  0xc5   : > { %vm342_vm9 = vc.u32 %v317_v19, %v336_v29  ;;  %v341_v43 = vadd.s32 %v336_v29, %v317_v19 }
  0xc6   : > { %v344_v32 = vsel %vm342_vm9, %v343_v30, %v339_v0 }
  0xc7   : > { %v345_v33 = vadd.s32 %v344_v32, %v340_v31 }
  0xc9   : > { %v346_v34 = vadd.s32 536870912, %v345_v33 }
  0xcb   : > { %v347_v35 = vshrl.u32 %v346_v34, 30 }
  0xcd   : > { %v348_v37 = vshll.u32 %v347_v35, 30  ;;  %v371_v56 = vsub.s32 4, %v347_v35 }
  0xcf   : > { %v349_v36 = vsub.s32 %v345_v33, %v348_v37  ;;  %v372_v61 = vsel %vm249_vm12, %v371_v56, %v347_v35 }
  0xd0   : > { %v374_v1 = vsel %vm248_vm13, 0, %v372_v61 }
  0xd1   : > { %vm350_vm10 = vcmp.lt.s32.totalorder %v349_v36, 0  ;;  %v351_v38 = vsub.s32 0, %v349_v36  ;;  %v391_v6 = vadd.s32 3, %v374_v1 }
  0xd3   : > { %v352_v39 = vsel %vm350_vm10, %v351_v38, %v349_v36  ;;  %v392_v12 = vand.u32 3, %v391_v6 }
  0xd4   : > { %v353_v41 = vclz %v352_v39 }
  0xd5   : > { %vm394_vm14 = vcmp.eq.s32.totalorder %v392_v12, 0  ;;  %vm397_vm15 = vcmp.eq.s32.totalorder %v392_v12, 2  ;;  %vm393_vm0 = vcmp.lt.s32.totalorder %v392_v12, 2 }
  0xd6   : > { %v544_v42 = vadd.s32 4294967294, %v353_v41 }
  0xd8   : > { %vm545_vm11 = vcmp.lt.s32.totalorder %v544_v42, 0 }
  0xd9   : > { %v356_v18 = vsel %vm545_vm11, 0, %v544_v42 }
  0xda   : > { %v357_v44 = vsub.s32 32, %v356_v18  ;;  %v361_v45 = vsub.s32 4294967266, %v356_v18  ;;  %v358_v46 = vshll.u32 %v349_v36, %v356_v18 }
  0xdc   : > { %v359_v47 = vshrl.u32 %v341_v43, %v357_v44  ;;  %v362_v48 = vadd.s32 127, %v361_v45 }
  0xde   : > { %v360_v40 = vor.u32 %v359_v47, %v358_v46  ;;  %v363_v49 = vshll.u32 %v362_v48, 23 }
  0xe0   : > { %v364_v50 = vor.u32 4788187, %v363_v49  ;;  %v367_v52 = vcvt.s32.f32 %v360_v40 }
  0xe2   : > { %v365_v51 = vand.u32 2147483647, %v364_v50 }
  0xe4   : > { %v368_v53 = vmul.f32 %v367_v52, %v365_v51 }
  0xe6   : > { %v369_v54 = vxor.u32 2147483648, %v368_v53 }
  0xe8   : > { %v370_v55 = vsel %vm249_vm12, %v369_v54, %v368_v53 }
  0xe9   : > { %v373_v57 = vsel %vm248_vm13, %v867_v7, %v370_v55 }
  0xea   : > { %v375_v58 = vmul.f32 %v373_v57, %v373_v57 }
  0xec   : > { %v376_v59 = vmul.f32 -0.001358992, %v375_v58  ;;  %v383_v60 = vmul.f32 -0.00019511016, %v375_v58 }
  0xee   : > { %v377_v62 = vadd.f32 0.041655596, %v376_v59  ;;  %v384_v63 = vadd.f32 0.008332121, %v383_v60 }
  0xf0   : > { %v378_v2 = vmul.f32 %v377_v62, %v375_v58  ;;  %v385_v3 = vmul.f32 %v384_v63, %v375_v58 }
  0xf2   : > { %v379_v4 = vadd.f32 -0.4999988, %v378_v2  ;;  %v386_v5 = vadd.f32 -0.16666654, %v385_v3 }
  0xf4   : > { %v380_v8 = vmul.f32 %v379_v4, %v375_v58  ;;  %v387_v11 = vmul.f32 %v386_v5, %v375_v58 }
  0xf6   : > { %v381_v9 = vadd.f32 1.0, %v380_v8  ;;  %v388_v10 = vadd.f32 1.0, %v387_v11 }
  0xf8   : > { %v389_v13 = vmul.f32 %v388_v10, %v373_v57  ;;  %v398_v14 = vxor.u32 2147483648, %v381_v9 }
  0xfa   : > { %v395_v15 = vxor.u32 2147483648, %v389_v13  ;;  %v399_v20 = vsel %vm397_vm15, %v398_v14, %v389_v13 }
  0xfc   : > { %v396_v17 = vsel %vm394_vm14, %v381_v9, %v395_v15 }
  0xfd   : > { %v400_v22 = vsel %vm393_vm0, %v396_v17, %v399_v20 }
  0xfe   : > { %v401_v23 = vsel %vm390_vm1, nan, %v400_v22 }
  0xff   : > { %v407_v26 = vadd.f32 %v406_v21, %v401_v23 }
 0x101   : > { %v411_v28 = vadd.f32 %v410_v24, %v407_v26  ;;  %v408_v16 = vmul.f32 %v407_v26, %v404_v25 }
 0x103   : > { %v415_v19 = vadd.f32 %v414_v27, %v411_v28  ;;  %409 = vst [vmem:[%s227_s15] sm:$0xff] %v408_v16  ;;  %v412_v7 = vmul.f32 %v411_v28, %v404_v25 }
 0x105   : > { %413 = vst [vmem:[%s227_s15 + $0x8] sm:$0xff] %v412_v7  ;;  %v416_v29 = vmul.f32 %v415_v19, %v404_v25 }
 0x107   : > { %417 = vst [vmem:[%s227_s15 + $0x10] sm:$0xff] %v416_v29 }
 0x108   : > { %684 = shalt.err (!%p681_p0)
}
 0x109   : > { %555 = dma.vmem_to_hbm [thread:$0]  (%p820_p9), %s435_s19, 384, %s437_s22, %s419_s23  }
 0x10a PF: > { %s448_s11 = sand.u32 1, %s719_s12   ;;  %p562_p2 = pnand %p539_p12, %p827_p11 }
 0x10b   : > { %s449_s5 = scalar_lea.sflag [#allocation4], %s448_s11 }
 0x10c   : > { %p563_p1 = pneg %p562_p2 }
 0x10e   : > { %714 = dma.done.wait (%p563_p1), %s449_s5, 384  }
 0x10f   : > { %716 = vsyncadd (%p563_p1), %s449_s5, 4294966912  ;;  %s19_s17 = sadd.s32 1, %s739_s17   ;;  %s978_s12 = smov %s723_s13 }
 0x110   : > { %p16_p3 = scmp.ge.s32.totalorder %s19_s17, 4   ;;  %s979_s13 = smov %s727_s14 }
 0x111   : > { %s980_s14 = smov %s825_s26  ;;  %s981_s15 = smov %s735_s16 }
 0x112   : > { %s982_s16 = smov %s984_s20  ;;  %18 = sbr.rel (!%p16_p3) target bundleno = 6 (0x6), region = 80 }
 0x117   :  { %455 = vsyncpa [#allocation3], 1 }
 0x118   :  { %457 = vsyncpa [#allocation3 + $0x1], 1 }
 0x119   :  { %458 = vsyncpa [#allocation4], 1 }
 0x11a   :  { %460 = vsyncpa [#allocation4 + $0x1], 1 }

</bundles_post_ra>
